<compile_context>
chip_gen: v5e
topology: v5e:2x2
jax: 0.10.0
libtpu: 0.0.40
codegen_flags: <defaults>
</compile_context>

<pallas_src>
import functools

import jax
import jax.numpy as jnp
from jax.experimental import pallas as pl
from jax.experimental.pallas import tpu as pltpu

LN_EPS = 1e-12


def bert_output_kernel(x_ref, res_ref, w_ref, b_ref, g_ref, beta_ref, o_ref,
                       *, precision):
    # x_ref:    (tm, H)  attention-output tile, native dtype (bf16/f32) -> MXU
    # res_ref:  (tm, H)  residual (input_tensor) tile
    # w_ref:    (H, H)   dense weight, pre-transposed to (in, out), native dtype
    # b_ref:    (1, H)   dense bias
    # g_ref:    (1, H)   LayerNorm weight
    # beta_ref: (1, H)   LayerNorm bias
    # Dense on the MXU in native dtype, f32 accumulation. Out-of-range rows of a
    # ragged last block only affect their own (discarded) output rows.
    h = jnp.dot(x_ref[...], w_ref[...],
                preferred_element_type=jnp.float32, precision=precision)

    # TODO(synk): dropout is identity here (inference / p=0); no RNG mask applied.

    # Bias + residual in f32; (1, H) params broadcast across the row tile.
    y = h + b_ref[...].astype(jnp.float32) + res_ref[...].astype(jnp.float32)

    # TF-style LayerNorm over the hidden axis, single-pass mean/variance:
    # var = E[y^2] - mean^2 (clamped at 0 against rounding), eps inside the rsqrt.
    u = jnp.mean(y, axis=-1, keepdims=True)
    s = jnp.maximum(jnp.mean(y * y, axis=-1, keepdims=True) - u * u, 0.0)
    y_norm = (y - u) * jax.lax.rsqrt(s + LN_EPS)

    out = g_ref[...].astype(jnp.float32) * y_norm + beta_ref[...].astype(jnp.float32)
    o_ref[...] = out.astype(o_ref.dtype)


def _round_up(x, m):
    return (x + m - 1) // m * m


def _pick_tm(n_rows, block_rows, align):
    """Row-tile choice: as large as block_rows to amortize per-step overhead, but
    keep >= 2 (preferably even) grid steps so both v7x TensorCores get work."""
    tm = min(block_rows, _round_up(n_rows, align))
    if n_rows > align:
        steps = pl.cdiv(n_rows, tm)
        if steps < 2:
            # Split a single oversized step so the megacore split is balanced.
            tm = _round_up(pl.cdiv(n_rows, 2), align)
            steps = pl.cdiv(n_rows, tm)
        if steps > 1 and steps % 2 == 1:
            # Nudge to an even step count when a modest shrink achieves it.
            tm_even = _round_up(pl.cdiv(n_rows, steps + 1), align)
            if tm_even >= align and pl.cdiv(n_rows, tm_even) % 2 == 0:
                tm = tm_even
    return tm


@functools.partial(jax.jit,
                   static_argnames=("block_rows", "precision", "weight_buffered"))
def _bert_output_fused(hidden_states, input_tensor, dense_w_t, dense_b, ln_w, ln_b,
                       block_rows, precision, weight_buffered):
    B, S, H = hidden_states.shape
    n_rows = B * S

    x2d = hidden_states.reshape(n_rows, H)
    r2d = input_tensor.reshape(n_rows, H)
    b2d = dense_b.reshape(1, H)
    g2d = ln_w.reshape(1, H)
    beta2d = ln_b.reshape(1, H)

    # bf16/int8 sublane packing prefers 16-row tiles; f32 needs 8.
    align = 8 if x2d.dtype.itemsize >= 4 else 16
    tm = _pick_tm(n_rows, block_rows, align)

    # No jnp.pad: ragged last row-block is masked by Pallas (loads of the
    # out-of-range rows are row-local and their stores are discarded).
    grid = (pl.cdiv(n_rows, tm),)

    # Grid-invariant weight: a single resident VMEM buffer is enough.
    if weight_buffered:
        w_spec = pl.BlockSpec((H, H), lambda i: (0, 0), pipeline_mode=pl.Buffered(1))
        n_w_buf = 1
    else:
        w_spec = pl.BlockSpec((H, H), lambda i: (0, 0))
        n_w_buf = 2

    # VMEM budget sized to actual usage (keeps v7x's 64 MiB/core comfortable and
    # still lifts v5e above its 16 MiB scoped default).
    in_b = x2d.dtype.itemsize
    w_b = dense_w_t.dtype.itemsize
    vmem_bytes = (2 * 2 * tm * H * in_b      # x + residual tiles, double-buffered
                  + 2 * tm * H * in_b        # output tile, double-buffered
                  + n_w_buf * H * H * w_b    # resident dense weight
                  + 4 * tm * H * 4           # f32 intermediates / compiler scratch
                  + 16 * H * 4)              # (1, H) params
    vmem_limit = int(max(vmem_bytes, 16 * 1024 * 1024))

    kernel = functools.partial(bert_output_kernel, precision=precision)

    out2d = pl.pallas_call(
        kernel,
        out_shape=jax.ShapeDtypeStruct((n_rows, H), hidden_states.dtype),
        grid_spec=pltpu.PrefetchScalarGridSpec(
            num_scalar_prefetch=0,
            grid=grid,
            in_specs=[
                # x / residual row tiles. (pl.Buffered(3) here only if xprof ever
                # shows exposed DMA; default double-buffering is sufficient.)
                pl.BlockSpec((tm, H), lambda i: (i, 0)),   # attention output rows
                pl.BlockSpec((tm, H), lambda i: (i, 0)),   # residual rows
                w_spec,                                    # dense weight (in, out)
                pl.BlockSpec((1, H), lambda i: (0, 0)),    # dense bias
                pl.BlockSpec((1, H), lambda i: (0, 0)),    # LN weight
                pl.BlockSpec((1, H), lambda i: (0, 0)),    # LN bias
            ],
            out_specs=pl.BlockSpec((tm, H), lambda i: (i, 0)),
        ),
        compiler_params=pltpu.CompilerParams(
            dimension_semantics=("parallel",),
            vmem_limit_bytes=vmem_limit,
        ),
    )(x2d, r2d, dense_w_t, b2d, g2d, beta2d)

    return out2d.reshape(B, S, H)


_WEIGHT_SINGLE_BUFFER_OK = None   # cached: does this build accept pl.Buffered(1)?


def bert_output_fused(hidden_states, input_tensor, dense_w_t, dense_b, ln_w, ln_b,
                      block_rows=512, precision=None):
    """Fused dense + residual + TF LayerNorm (BertSelfOutput / BertCrossOutput).

    hidden_states, input_tensor: [B, S, H]
    dense_w_t: [H_in, H_out]  (torch Linear weight transposed ONCE on the host)
    dense_b, ln_w, ln_b: [H]
    block_rows: row tile (512 default; bf16 callers may use 1024 on v5e/v6e)
    precision: None (fast MXU path) or jax.lax.Precision.HIGHEST for strict f32
               parity with PyTorch (default precision is bf16-pass based, so the
               f32 path carries a ~1e-5-level tolerance).
    """
    global _WEIGHT_SINGLE_BUFFER_OK
    args = (hidden_states, input_tensor, dense_w_t, dense_b, ln_w, ln_b)
    if _WEIGHT_SINGLE_BUFFER_OK is None:
        try:
            out = _bert_output_fused(*args, block_rows=block_rows,
                                     precision=precision, weight_buffered=True)
            _WEIGHT_SINGLE_BUFFER_OK = True
            return out
        except Exception:
            # Older builds may not accept pipeline_mode on top-level BlockSpecs;
            # fall back to default double-buffering of the weight (perf-neutral,
            # slightly more VMEM).
            _WEIGHT_SINGLE_BUFFER_OK = False
    return _bert_output_fused(*args, block_rows=block_rows, precision=precision,
                              weight_buffered=_WEIGHT_SINGLE_BUFFER_OK)


def reference(hidden_states, input_tensor, dense_w_t, dense_b, ln_w, ln_b):
    h = jnp.einsum("bsh,ho->bso", hidden_states, dense_w_t) + dense_b
    y = h + input_tensor
    u = jnp.mean(y, axis=-1, keepdims=True)
    s = jnp.mean((y - u) ** 2, axis=-1, keepdims=True)
    yn = (y - u) / jnp.sqrt(s + LN_EPS)
    return ln_w * yn + ln_b


if __name__ == "__main__":
    B, S, H = 2, 8, 32

    key = jax.random.PRNGKey(0)
    k1, k2, k3, k4 = jax.random.split(key, 4)

    hidden_states = jax.random.normal(k1, (B, S, H), dtype=jnp.float32)
    input_tensor = jax.random.normal(k2, (B, S, H), dtype=jnp.float32)

    # Torch-layout params (Linear weight [out, in]); LayerNorm weight=1, bias=0.
    dense_w = jax.random.normal(k3, (H, H), dtype=jnp.float32) * 0.02
    dense_b = jax.random.normal(k4, (H,), dtype=jnp.float32) * 0.02
    ln_w = jnp.ones((H,), dtype=jnp.float32)
    ln_b = jnp.zeros((H,), dtype=jnp.float32)

    # One-time layout fix OUTSIDE the jitted call: [out, in] -> [in, out].
    dense_w_t = jnp.asarray(dense_w.T)

    ref = reference(hidden_states, input_tensor, dense_w_t, dense_b, ln_w, ln_b)

    # --- f32 path (default MXU precision; tolerance documented in the wrapper) ---
    out = bert_output_fused(hidden_states, input_tensor, dense_w_t, dense_b, ln_w, ln_b)
    out = jax.block_until_ready(out)
    assert out.shape == (B, S, H)
    assert jnp.allclose(out, ref, atol=1e-5, rtol=1e-5), \
        f"f32 max err {jnp.max(jnp.abs(out - ref))}"

    # --- bf16 path (native-dtype MXU feed, f32 accumulation; loose tolerance) ---
    hs_bf = hidden_states.astype(jnp.bfloat16)
    it_bf = input_tensor.astype(jnp.bfloat16)
    w_bf = dense_w_t.astype(jnp.bfloat16)
    b_bf = dense_b.astype(jnp.bfloat16)
    out_bf = bert_output_fused(hs_bf, it_bf, w_bf, b_bf,
                               ln_w.astype(jnp.bfloat16), ln_b.astype(jnp.bfloat16))
    out_bf = jax.block_until_ready(out_bf)
    assert jnp.allclose(out_bf.astype(jnp.float32), ref, atol=5e-2, rtol=5e-2), \
        f"bf16 max err {jnp.max(jnp.abs(out_bf.astype(jnp.float32) - ref))}"

    # --- ragged row count (exercises the no-pad masked last block) ---
    hs_r = hidden_states[:, : S - 3]
    it_r = input_tensor[:, : S - 3]
    out_r = bert_output_fused(hs_r, it_r, dense_w_t, dense_b, ln_w, ln_b)
    out_r = jax.block_until_ready(out_r)
    ref_r = reference(hs_r, it_r, dense_w_t, dense_b, ln_w, ln_b)
    assert jnp.allclose(out_r, ref_r, atol=1e-5, rtol=1e-5), \
        f"ragged max err {jnp.max(jnp.abs(out_r - ref_r))}"

    print("KERNEL_OK")
</pallas_src>

<mosaic_0001>
module attributes {stable_mosaic.version = 11 : i64} {
  func.func @bert_output_kernel(%arg0: i32, %arg1: memref<8x32xf32, #tpu.memory_space<vmem>>, %arg2: memref<8x32xf32, #tpu.memory_space<vmem>>, %arg3: memref<32x32xf32, #tpu.memory_space<vmem>>, %arg4: memref<1x32xf32, #tpu.memory_space<vmem>>, %arg5: memref<1x32xf32, #tpu.memory_space<vmem>>, %arg6: memref<1x32xf32, #tpu.memory_space<vmem>>, %arg7: memref<8x32xf32, #tpu.memory_space<vmem>>) attributes {dimension_semantics = [#tpu.dimension_semantics<parallel>], iteration_bounds = array<i64: 2>, scalar_prefetch = 0 : i64, scratch_operands = 0 : i64, tpu.core_type = #tpu.core_type<tc>, window_params = [{transform_indices = @transform_0, window_bounds = array<i64: 8, 32>}, {transform_indices = @transform_1, window_bounds = array<i64: 8, 32>}, {pipeline_mode = #tpu.pipeline_mode<synchronous>, transform_indices = @transform_2, window_bounds = array<i64: 32, 32>}, {pipeline_mode = #tpu.pipeline_mode<synchronous>, transform_indices = @transform_3, window_bounds = array<i64: 1, 32>}, {pipeline_mode = #tpu.pipeline_mode<synchronous>, transform_indices = @transform_4, window_bounds = array<i64: 1, 32>}, {pipeline_mode = #tpu.pipeline_mode<synchronous>, transform_indices = @transform_5, window_bounds = array<i64: 1, 32>}, {transform_indices = @transform_6, window_bounds = array<i64: 8, 32>}]} {
    %c0 = arith.constant 0 : index
    %c0_0 = arith.constant 0 : index
    %0 = vector.load %arg1[%c0, %c0_0] : memref<8x32xf32, #tpu.memory_space<vmem>>, vector<8x32xf32>
    %c0_1 = arith.constant 0 : index
    %c0_2 = arith.constant 0 : index
    %1 = vector.load %arg3[%c0_1, %c0_2] : memref<32x32xf32, #tpu.memory_space<vmem>>, vector<32x32xf32>
    %cst = arith.constant dense<0.000000e+00> : vector<8x32xf32>
    %2 = tpu.matmul %0, %1, %cst {dimension_numbers = #tpu.dot_dimension_numbers<[1], [0], [0], [1], [0, 0, 1, 1], [], []>} : vector<8x32xf32>, vector<32x32xf32>, vector<8x32xf32> -> vector<8x32xf32>
    %c0_3 = arith.constant 0 : index
    %c0_4 = arith.constant 0 : index
    %3 = vector.load %arg4[%c0_3, %c0_4] : memref<1x32xf32, #tpu.memory_space<vmem>>, vector<1x32xf32>
    %4 = vector.broadcast %3 : vector<1x32xf32> to vector<8x32xf32>
    %5 = arith.addf %2, %4 : vector<8x32xf32>
    %c0_5 = arith.constant 0 : index
    %c0_6 = arith.constant 0 : index
    %6 = vector.load %arg2[%c0_5, %c0_6] : memref<8x32xf32, #tpu.memory_space<vmem>>, vector<8x32xf32>
    %7 = arith.addf %5, %6 : vector<8x32xf32>
    %cst_7 = arith.constant dense<0.000000e+00> : vector<8xf32>
    %8 = vector.multi_reduction <add>, %7, %cst_7 [1] : vector<8x32xf32> to vector<8xf32>
    %9 = vector.shape_cast %8 : vector<8xf32> to vector<8x1xf32>
    %cst_8 = arith.constant 3.200000e+01 : f32
    %10 = vector.broadcast %cst_8 : f32 to vector<8x1xf32>
    %11 = arith.divf %9, %10 : vector<8x1xf32>
    %12 = arith.mulf %7, %7 : vector<8x32xf32>
    %cst_9 = arith.constant dense<0.000000e+00> : vector<8xf32>
    %13 = vector.multi_reduction <add>, %12, %cst_9 [1] : vector<8x32xf32> to vector<8xf32>
    %14 = vector.shape_cast %13 : vector<8xf32> to vector<8x1xf32>
    %cst_10 = arith.constant 3.200000e+01 : f32
    %15 = vector.broadcast %cst_10 : f32 to vector<8x1xf32>
    %16 = arith.divf %14, %15 : vector<8x1xf32>
    %17 = arith.mulf %11, %11 : vector<8x1xf32>
    %18 = arith.subf %16, %17 : vector<8x1xf32>
    %cst_11 = arith.constant 0.000000e+00 : f32
    %19 = vector.broadcast %cst_11 : f32 to vector<8x1xf32>
    %20 = arith.maximumf %18, %19 : vector<8x1xf32>
    %21 = vector.broadcast %11 : vector<8x1xf32> to vector<8x32xf32>
    %22 = arith.subf %7, %21 : vector<8x32xf32>
    %cst_12 = arith.constant 9.99999996E-13 : f32
    %23 = vector.broadcast %cst_12 : f32 to vector<8x1xf32>
    %24 = arith.addf %20, %23 : vector<8x1xf32>
    %25 = math.rsqrt %24 : vector<8x1xf32>
    %26 = vector.broadcast %25 : vector<8x1xf32> to vector<8x32xf32>
    %27 = arith.mulf %22, %26 : vector<8x32xf32>
    %c0_13 = arith.constant 0 : index
    %c0_14 = arith.constant 0 : index
    %28 = vector.load %arg5[%c0_13, %c0_14] : memref<1x32xf32, #tpu.memory_space<vmem>>, vector<1x32xf32>
    %29 = vector.broadcast %28 : vector<1x32xf32> to vector<8x32xf32>
    %30 = arith.mulf %29, %27 : vector<8x32xf32>
    %c0_15 = arith.constant 0 : index
    %c0_16 = arith.constant 0 : index
    %31 = vector.load %arg6[%c0_15, %c0_16] : memref<1x32xf32, #tpu.memory_space<vmem>>, vector<1x32xf32>
    %32 = vector.broadcast %31 : vector<1x32xf32> to vector<8x32xf32>
    %33 = arith.addf %30, %32 : vector<8x32xf32>
    %c0_17 = arith.constant 0 : index
    %c0_18 = arith.constant 0 : index
    %34 = vector.load %arg7[%c0_17, %c0_18] : memref<8x32xf32, #tpu.memory_space<vmem>>, vector<8x32xf32>
    tpu.vector_store %arg7[%c0_17, %c0_18], %33 {strides = array<i32>} : memref<8x32xf32, #tpu.memory_space<vmem>>, vector<8x32xf32>,
    return
  }
  func.func @transform_0(%arg0: i32) -> (i32, i32) {
    %c0_i32 = arith.constant 0 : i32
    %c0_i32_0 = arith.constant 0 : i32
    return %arg0, %c0_i32 : i32, i32
  }
  func.func @transform_1(%arg0: i32) -> (i32, i32) {
    %c0_i32 = arith.constant 0 : i32
    %c0_i32_0 = arith.constant 0 : i32
    return %arg0, %c0_i32 : i32, i32
  }
  func.func @transform_2(%arg0: i32) -> (i32, i32) {
    %c0_i32 = arith.constant 0 : i32
    %c0_i32_0 = arith.constant 0 : i32
    %c0_i32_1 = arith.constant 0 : i32
    return %c0_i32, %c0_i32_0 : i32, i32
  }
  func.func @transform_3(%arg0: i32) -> (i32, i32) {
    %c0_i32 = arith.constant 0 : i32
    %c0_i32_0 = arith.constant 0 : i32
    %c0_i32_1 = arith.constant 0 : i32
    return %c0_i32, %c0_i32_0 : i32, i32
  }
  func.func @transform_4(%arg0: i32) -> (i32, i32) {
    %c0_i32 = arith.constant 0 : i32
    %c0_i32_0 = arith.constant 0 : i32
    %c0_i32_1 = arith.constant 0 : i32
    return %c0_i32, %c0_i32_0 : i32, i32
  }
  func.func @transform_5(%arg0: i32) -> (i32, i32) {
    %c0_i32 = arith.constant 0 : i32
    %c0_i32_0 = arith.constant 0 : i32
    %c0_i32_1 = arith.constant 0 : i32
    return %c0_i32, %c0_i32_0 : i32, i32
  }
  func.func @transform_6(%arg0: i32) -> (i32, i32) {
    %c0_i32 = arith.constant 0 : i32
    %c0_i32_0 = arith.constant 0 : i32
    return %arg0, %c0_i32 : i32, i32
  }
}

module attributes {stable_mosaic.version = 11 : i64} {
  func.func @bert_output_kernel(%arg0: i32, %arg1: memref<8x32xf32, #tpu.memory_space<vmem>>, %arg2: memref<8x32xf32, #tpu.memory_space<vmem>>, %arg3: memref<32x32xf32, #tpu.memory_space<vmem>>, %arg4: memref<1x32xf32, #tpu.memory_space<vmem>>, %arg5: memref<1x32xf32, #tpu.memory_space<vmem>>, %arg6: memref<1x32xf32, #tpu.memory_space<vmem>>, %arg7: memref<8x32xf32, #tpu.memory_space<vmem>>) attributes {dimension_semantics = [#tpu.dimension_semantics<parallel>], iteration_bounds = array<i64: 2>, scalar_prefetch = 0 : i64, scratch_operands = 0 : i64, tpu.core_type = #tpu.core_type<tc>, window_params = [{transform_indices = @transform_0, window_bounds = array<i64: 8, 32>}, {transform_indices = @transform_1, window_bounds = array<i64: 8, 32>}, {pipeline_mode = #tpu.pipeline_mode<synchronous>, transform_indices = @transform_2, window_bounds = array<i64: 32, 32>}, {pipeline_mode = #tpu.pipeline_mode<synchronous>, transform_indices = @transform_3, window_bounds = array<i64: 1, 32>}, {pipeline_mode = #tpu.pipeline_mode<synchronous>, transform_indices = @transform_4, window_bounds = array<i64: 1, 32>}, {pipeline_mode = #tpu.pipeline_mode<synchronous>, transform_indices = @transform_5, window_bounds = array<i64: 1, 32>}, {transform_indices = @transform_6, window_bounds = array<i64: 8, 32>}]} {
    %c0 = arith.constant 0 : index
    %c0_0 = arith.constant 0 : index
    %0 = vector.load %arg1[%c0, %c0_0] : memref<8x32xf32, #tpu.memory_space<vmem>>, vector<8x32xf32>
    %c0_1 = arith.constant 0 : index
    %c0_2 = arith.constant 0 : index
    %1 = vector.load %arg3[%c0_1, %c0_2] : memref<32x32xf32, #tpu.memory_space<vmem>>, vector<32x32xf32>
    %cst = arith.constant dense<0.000000e+00> : vector<8x32xf32>
    %2 = tpu.matmul %0, %1, %cst {dimension_numbers = #tpu.dot_dimension_numbers<[1], [0], [0], [1], [0, 0, 1, 1], [], []>} : vector<8x32xf32>, vector<32x32xf32>, vector<8x32xf32> -> vector<8x32xf32>
    %c0_3 = arith.constant 0 : index
    %c0_4 = arith.constant 0 : index
    %3 = vector.load %arg4[%c0_3, %c0_4] : memref<1x32xf32, #tpu.memory_space<vmem>>, vector<1x32xf32>
    %4 = vector.broadcast %3 : vector<1x32xf32> to vector<8x32xf32>
    %5 = arith.addf %2, %4 : vector<8x32xf32>
    %c0_5 = arith.constant 0 : index
    %c0_6 = arith.constant 0 : index
    %6 = vector.load %arg2[%c0_5, %c0_6] : memref<8x32xf32, #tpu.memory_space<vmem>>, vector<8x32xf32>
    %7 = arith.addf %5, %6 : vector<8x32xf32>
    %cst_7 = arith.constant dense<0.000000e+00> : vector<8xf32>
    %8 = vector.multi_reduction <add>, %7, %cst_7 [1] : vector<8x32xf32> to vector<8xf32>
    %9 = vector.shape_cast %8 : vector<8xf32> to vector<8x1xf32>
    %cst_8 = arith.constant 3.200000e+01 : f32
    %10 = vector.broadcast %cst_8 : f32 to vector<8x1xf32>
    %11 = arith.divf %9, %10 : vector<8x1xf32>
    %12 = arith.mulf %7, %7 : vector<8x32xf32>
    %cst_9 = arith.constant dense<0.000000e+00> : vector<8xf32>
    %13 = vector.multi_reduction <add>, %12, %cst_9 [1] : vector<8x32xf32> to vector<8xf32>
    %14 = vector.shape_cast %13 : vector<8xf32> to vector<8x1xf32>
    %cst_10 = arith.constant 3.200000e+01 : f32
    %15 = vector.broadcast %cst_10 : f32 to vector<8x1xf32>
    %16 = arith.divf %14, %15 : vector<8x1xf32>
    %17 = arith.mulf %11, %11 : vector<8x1xf32>
    %18 = arith.subf %16, %17 : vector<8x1xf32>
    %cst_11 = arith.constant 0.000000e+00 : f32
    %19 = vector.broadcast %cst_11 : f32 to vector<8x1xf32>
    %20 = arith.maximumf %18, %19 : vector<8x1xf32>
    %21 = vector.broadcast %11 : vector<8x1xf32> to vector<8x32xf32>
    %22 = arith.subf %7, %21 : vector<8x32xf32>
    %cst_12 = arith.constant 9.99999996E-13 : f32
    %23 = vector.broadcast %cst_12 : f32 to vector<8x1xf32>
    %24 = arith.addf %20, %23 : vector<8x1xf32>
    %25 = math.rsqrt %24 : vector<8x1xf32>
    %26 = vector.broadcast %25 : vector<8x1xf32> to vector<8x32xf32>
    %27 = arith.mulf %22, %26 : vector<8x32xf32>
    %c0_13 = arith.constant 0 : index
    %c0_14 = arith.constant 0 : index
    %28 = vector.load %arg5[%c0_13, %c0_14] : memref<1x32xf32, #tpu.memory_space<vmem>>, vector<1x32xf32>
    %29 = vector.broadcast %28 : vector<1x32xf32> to vector<8x32xf32>
    %30 = arith.mulf %29, %27 : vector<8x32xf32>
    %c0_15 = arith.constant 0 : index
    %c0_16 = arith.constant 0 : index
    %31 = vector.load %arg6[%c0_15, %c0_16] : memref<1x32xf32, #tpu.memory_space<vmem>>, vector<1x32xf32>
    %32 = vector.broadcast %31 : vector<1x32xf32> to vector<8x32xf32>
    %33 = arith.addf %30, %32 : vector<8x32xf32>
    %c0_17 = arith.constant 0 : index
    %c0_18 = arith.constant 0 : index
    %34 = vector.load %arg7[%c0_17, %c0_18] : memref<8x32xf32, #tpu.memory_space<vmem>>, vector<8x32xf32>
    tpu.vector_store %arg7[%c0_17, %c0_18], %33 {strides = array<i32>} : memref<8x32xf32, #tpu.memory_space<vmem>>, vector<8x32xf32>,
    return
  }
  func.func @transform_0(%arg0: i32) -> (i32, i32) {
    %c0_i32 = arith.constant 0 : i32
    %c0_i32_0 = arith.constant 0 : i32
    return %arg0, %c0_i32 : i32, i32
  }
  func.func @transform_1(%arg0: i32) -> (i32, i32) {
    %c0_i32 = arith.constant 0 : i32
    %c0_i32_0 = arith.constant 0 : i32
    return %arg0, %c0_i32 : i32, i32
  }
  func.func @transform_2(%arg0: i32) -> (i32, i32) {
    %c0_i32 = arith.constant 0 : i32
    %c0_i32_0 = arith.constant 0 : i32
    %c0_i32_1 = arith.constant 0 : i32
    return %c0_i32, %c0_i32_0 : i32, i32
  }
  func.func @transform_3(%arg0: i32) -> (i32, i32) {
    %c0_i32 = arith.constant 0 : i32
    %c0_i32_0 = arith.constant 0 : i32
    %c0_i32_1 = arith.constant 0 : i32
    return %c0_i32, %c0_i32_0 : i32, i32
  }
  func.func @transform_4(%arg0: i32) -> (i32, i32) {
    %c0_i32 = arith.constant 0 : i32
    %c0_i32_0 = arith.constant 0 : i32
    %c0_i32_1 = arith.constant 0 : i32
    return %c0_i32, %c0_i32_0 : i32, i32
  }
  func.func @transform_5(%arg0: i32) -> (i32, i32) {
    %c0_i32 = arith.constant 0 : i32
    %c0_i32_0 = arith.constant 0 : i32
    %c0_i32_1 = arith.constant 0 : i32
    return %c0_i32, %c0_i32_0 : i32, i32
  }
  func.func @transform_6(%arg0: i32) -> (i32, i32) {
    %c0_i32 = arith.constant 0 : i32
    %c0_i32_0 = arith.constant 0 : i32
    return %arg0, %c0_i32 : i32, i32
  }
}

</mosaic_0001>

<bundles_post_ra>
// kernel: _bert_output_fused.1
= control target key start
LH: loop header
LB: loop body
LE: loop exit
PB: predicated region body
PF: predicated region fallthrough
CT: control target
= control target key end

     0   :  { %s998_s0 = inlined_call_operand.hbm [shape: f32[16,32], index: 0, kind: input, shape index: {}]   ;;  %s999_s1 = inlined_call_operand.hbm [shape: f32[16,32], index: 1, kind: input, shape index: {}]   ;;  %s1000_s2 = inlined_call_operand.hbm [shape: f32[32,32], index: 2, kind: input, shape index: {}]   ;;  %s1001_s3 = inlined_call_operand.vmem [shape: f32[1,32], index: 3, kind: input, shape index: {}]   ;;  %s1002_s4 = inlined_call_operand.vmem [shape: f32[1,32], index: 4, kind: input, shape index: {}]   ;;  %s1003_s5 = inlined_call_operand.vmem [shape: f32[1,32], index: 5, kind: input, shape index: {}]   ;;  %s1004_s6 = inlined_call_operand.hbm [shape: f32[16,32], index: 6, kind: output, shape index: {}]  }
   0x1   :  { %1009 = sst [smem:[#allocation17_spill]] %s1000_s2 }
   0x2   :  { %11 = vsyncpa [#allocation3], 0 }
   0x3   :  { %13 = vsyncpa [#allocation3 + $0x1], 0 }
   0x4   :  { %14 = vsyncpa [#allocation6], 0 }
   0x5   :  { %16 = vsyncpa [#allocation6 + $0x1], 0 }
   0x6   :  { %17 = vsyncpa [#allocation4], 0 }
   0x7   :  { %19 = vsyncpa [#allocation4 + $0x1], 0  ;;  %s815_s21 = smov 0   ;;  %s817_s22 = smov 0  }
   0x8   :  { %s819_s23 = smov 0   ;;  %s821_s24 = smov 0  }
   0x9 LB: > { %1010 = sst [smem:[#allocation13_spill]] %s770_s23  ;;  %s839_s28 = sadd.s32 4294967295, %s774_s24   ;;  %s774_s24 = sphi %s821_s24, %s1023_s24   ;;  %s770_s23 = sphi %s819_s23, %s1025_s23   ;;  %s766_s22 = sphi %s817_s22, %s1027_s22   ;;  %s762_s21 = sphi %s815_s21, %s1026_s21  }
   0xa   : > { %1011 = sst [smem:[#allocation14_spill]] %s774_s24  ;;  %p521_p0 = scmp.ge.s32.totalorder %s774_s24, 1 }
   0xb   : > { %s1012_s2 = sld [smem:[#allocation17_spill]]  ;;  %p46_p1 = scmp.eq.s32.totalorder %s839_s28, 0 }
   0xc   : > { %p192_p2 = scmp.lt.s32.totalorder %s774_s24, 3  ;;  %s776_s30 = smov [#allocation7]  }
   0xd   : > { %s205_s7 = sshll.u32 %s776_s30, 4  ;;  %s777_s8 = smov 128   ;;  %s206_s7 = int_to_ptr.vmem [resolvable:$true] %s205_s7 }
   0xe   : > { %p844_p3 = pnand %p521_p0, %p192_p2  ;;  %s778_s9 = smov 8  }
   0xf   : > { %s520_s10 = sadd.s32 4294967294, %s774_s24   ;;  %s855_s11 = sadd.s32 1, %s774_s24  }
  0x10   : > { %p548_p4 = pneg %p844_p3  ;;  %1014 = sst [smem:[#allocation15_spill]] %s855_s11 }
  0x11   : > { %s203_s27 = sshll.u32 %s1012_s2, 4  ;;  %s32_s12 = sadd.s32 1, %s770_s23  ;;  %s204_s27 = int_to_ptr.hbm [resolvable:$true] %s203_s27 }
  0x12   : > { %p549_p6 = pnand %p548_p4, %p46_p1  ;;  %s29_s13 = ssub.s32 %s774_s24, %s855_s11 }
  0x13   : > { %p39_p7 = scmp.ne.s32.totalorder %s770_s23, %s766_s22  ;;  %p30_p8 = scmp.eq.s32.totalorder %s29_s13, 0 }
  0x14   : > { %551 = dma.hbm_to_vmem [thread:$0]  (!%p549_p6), %s204_s27, 512, %s206_s7, [#allocation6], %s777_s8, %s777_s8, %s778_s9  }
  0x15   : > { %p40_p9 = scmp.eq.s32.totalorder %s774_s24, 0  ;;  %p45_p10 = scmp.ne.s32.totalorder %s766_s22, %s762_s21 }
  0x16   : > { %p179_p11 = scmp.eq.s32.totalorder %s839_s28, 1  ;;  %p185_p2 = scmp.eq.s32.totalorder %s520_s10, 1 }
  0x17   : > { %s867_s14 = scalar_select %p30_p8, %s770_s23, %s32_s12  }
  0x18   : > { %p869_p12 = por %p40_p9, %p39_p7  ;;  %p875_p13 = por %p46_p1, %p45_p10 }
  0x19   : > { %1015 = sst [smem:[#allocation16_spill]] %s867_s14  ;;  %p879_p0 = por %p179_p11, %p39_p7 }
  0x1a   : > { %p564_p4 = scmp.lt.s32.totalorder %s774_s24, 2  ;;  %s228_s18 = sand.u32 1, %s770_s23  }
  0x1b   : > { %p885_p6 = por %p185_p2, %p45_p10  ;;  %s524_s20 = sshll.u32 %s228_s18, 3 }
  0x1c   : > { %s525_s25 = sshll.u32 %s774_s24, 3  ;;  %s232_s8 = scalar_lea.vmem [#allocation2], %s524_s20 }
  0x1d   : > { %s236_s30 = scalar_lea.hbm %s998_s0, %s525_s25  ;;  %s240_s9 = sshll.u32 %s232_s8, 4  ;;  %s241_s9 = int_to_ptr.vmem [resolvable:$true] %s240_s9 }
  0x1e   : > { %s238_s7 = sshll.u32 %s236_s30, 4  ;;  %p895_p7 = pnand %p564_p4, %p869_p12  ;;  %s239_s7 = int_to_ptr.hbm [resolvable:$true] %s238_s7 }
  0x1f   : > { %s255_s2 = scalar_lea.hbm %s999_s1, %s525_s25  ;;  %s247_s14 = sand.u32 1, %s774_s24  }
  0x20   : > { %s229_s23 = scalar_lea.sflag [#allocation3], %s228_s18  ;;  %s640_s26 = sshra.s32 %s239_s7, 4  ;;  %s641_s26 = int_to_ptr.hbm [resolvable:$true] %s640_s26 }
  0x21   : > { %s642_s27 = scalar_lea.hbm %s641_s26, 8  ;;  %p644_p9 = pneg %p895_p7 }
  0x22   : > { %p643_p8 = scmp.ne.s32.totalorder %s641_s26, %s642_s27  ;;  %s647_s8 = scalar_lea.hbm %s998_s0, 16 }
  0x23   : > { %p648_p12 = scmp.lt.s32.totalorder %s641_s26, %s998_s0  ;;  %p649_p2 = scmp.lt.s32.totalorder %s647_s8, %s642_s27 }
  0x24   : > { %p645_p10 = pnand %p644_p9, %p643_p8 }
  0x25   : > { %p650_p4 = por %p649_p2, %p648_p12 }
  0x26   : > { %p646_p11 = pneg %p645_p10 }
  0x28   : > { %p651_p5 = pnand %p650_p4, %p646_p11 }
  0x2a   : > { %654 = shalt.err (!%p651_p5)
}
  0x2b   : > { %555 = dma.hbm_to_vmem [thread:$0]  (!%p895_p7), %s239_s7, 128, %s241_s9, %s229_s23  }
  0x2c   : > { %s257_s18 = sshll.u32 %s255_s2, 4  ;;  %s251_s25 = scalar_lea.vmem [#allocation5], %s524_s20  ;;  %s258_s18 = int_to_ptr.hbm [resolvable:$true] %s257_s18 }
  0x2d   : > { %s259_s11 = sshll.u32 %s251_s25, 4  ;;  %s248_s24 = scalar_lea.sflag [#allocation6], %s247_s14  ;;  %s260_s11 = int_to_ptr.vmem [resolvable:$true] %s259_s11 }
  0x2e   : > { %s670_s15 = sshra.s32 %s258_s18, 4  ;;  %s677_s8 = scalar_lea.hbm %s999_s1, 16  ;;  %s671_s15 = int_to_ptr.hbm [resolvable:$true] %s670_s15 }
  0x2f   : > { %s672_s30 = scalar_lea.hbm %s671_s15, 8  ;;  %p678_p5 = scmp.lt.s32.totalorder %s671_s15, %s999_s1 }
  0x30   : > { %p673_p8 = scmp.ne.s32.totalorder %s671_s15, %s672_s30  ;;  %p679_p11 = scmp.lt.s32.totalorder %s677_s8, %s672_s30 }
  0x32   : > { %p675_p10 = pnand %p673_p8, %p644_p9  ;;  %p680_p2 = por %p679_p11, %p678_p5 }
  0x34   : > { %p676_p12 = pneg %p675_p10 }
  0x36   : > { %p681_p4 = pnand %p680_p2, %p676_p12 }
  0x38   : > { %684 = shalt.err (!%p681_p4)
}
  0x39   : > { %558 = dma.hbm_to_vmem [thread:$0]  (!%p895_p7), %s258_s18, 128, %s260_s11, %s248_s24  }
  0x3a   : > { %268 = sbr.rel (%p844_p3) target bundleno = 367 (0x16f), region = 44  ;;  %s930_s2 = sand.u32 (!%p844_p3), 1, %s766_s22  }
  0x3b   : > { %s933_s14 = sshll.u32 (!%p844_p3), %s930_s2, 3  ;;  %s271_s20 = scalar_lea.sflag (!%p844_p3), [#allocation3], %s930_s2 }
  0x3c   : > { %s274_s7 = scalar_lea.vmem (!%p844_p3), [#allocation2], %s933_s14 }
  0x3f   : > { %745 = dma.done.wait (%p875_p13), %s271_s20, 128  }
  0x40   : > { %747 = vsyncadd (%p875_p13), %s271_s20, 4294967168  ;;  %s280_s24 = sand.u32 1, %s839_s28   ;;  %s284_s11 = scalar_lea.vmem [#allocation5], %s933_s14 }
  0x41   : > { %s281_s29 = scalar_lea.sflag [#allocation6], %s280_s24 }
  0x42   : > { %749 = dma.done.wait (%p875_p13), %s281_s29, 128  }
  0x43   : > { %751 = vsyncadd (%p875_p13), %s281_s29, 4294967168 }
  0x44   : > { %753 = dma.done.wait (%p46_p1), [#allocation6], 512  }
  0x45   : > { %755 = vsyncadd (%p46_p1), [#allocation6], 4294966784  ;;  %v328_v0 = vld [vmem:[#allocation7 + $0x18] sm:$0xff]  ;;  %v327_v1 = vld [vmem:[#allocation7 + $0x10] sm:$0xff]  ;;  %vm333_vm0 = vcmask 261120   ;;  %v779_v13 = vmov 32.0  }
  0x46   : > { %349 = vmatpush.msra.mxu0 %v328_v0  ;;  %v326_v2 = vld [vmem:[#allocation7 + $0x8] sm:$0xff]  ;;  %v325_v3 = vld [vmem:[#allocation7] sm:$0xff]  ;;  %v357_v7 = vld [vmem:[%s284_s11] sm:$0xff]  ;;  %606 = vrcp.f32 %v779_v13  ;;  %s535_s10 = sshll.u32 %s839_s28, 3  ;;  %s323_s28 = scalar_lea.vmem [#allocation8], %s933_s14 }
  0x47   : > { %v324_v4 = vld [vmem:[%s274_s7] sm:$0xff]  ;;  %s413_s30 = scalar_lea.hbm %s1004_s6, %s535_s10  ;;  %s415_s8 = sshll.u32 %s323_s28, 4  ;;  %s416_s8 = int_to_ptr.vmem [resolvable:$true] %s415_s8 }
  0x48   : > { %350 = vmatpush.msra.mxu0 %v327_v1  ;;  %v603_v5 = vld [vmem:[%s1001_s3] ss:$0 sm:$0xff]  ;;  %s417_s12 = sshll.u32 %s413_s30, 4  ;;  %s403_s23 = scalar_lea.sflag [#allocation4], %s930_s2  ;;  %s418_s12 = int_to_ptr.hbm [resolvable:$true] %s417_s12 }
  0x49   : > { %v604_v35 = vld [vmem:[%s1002_s4] ss:$0 sm:$0xff]  ;;  %s714_s20 = sshra.s32 %s418_s12, 4  ;;  %s720_s14 = scalar_lea.hbm %s1004_s6, 16  ;;  %s715_s20 = int_to_ptr.hbm [resolvable:$true] %s714_s20 }
  0x4a   : > { %351 = vmatpush.msra.mxu0 %v326_v2  ;;  %v605_v38 = vld [vmem:[%s1003_s5] ss:$0 sm:$0xff]  ;;  %s716_s7 = scalar_lea.hbm %s715_s20, 8  ;;  %p721_p7 = scmp.lt.s32.totalorder %s715_s20, %s1004_s6 }
  0x4b   : > { %p717_p1 = scmp.ne.s32.totalorder %s715_s20, %s716_s7  ;;  %p722_p9 = scmp.lt.s32.totalorder %s720_s14, %s716_s7 }
  0x4c   : > { %352 = vmatpush.msra.mxu0 %v325_v3  ;;  %v607_v14 = vpop.eup %606 }
  0x4d   : > { %533 = vmatmul.msk.f32.vlgmr.msra.gmra.mxu0 %vm333_vm0, %v324_v4  ;;  %v363_v15 = vmul.f32 32.0, %v607_v14  ;;  %vm367_vm1 = vweird.f32 %v607_v14  ;;  %p718_p3 = pnand %p717_p1, %p879_p0  ;;  %p723_p8 = por %p722_p9, %p721_p7 }
  0x4f   : > { %v364_v16 = vsub.f32 1.0, %v363_v15  ;;  %p719_p13 = pneg %p718_p3 }
  0x51   : > { %v365_v17 = vmul.f32 %v607_v14, %v364_v16  ;;  %p724_p10 = pnand %p723_p8, %p719_p13 }
  0x53   : > { %v366_v18 = vadd.f32 %v607_v14, %v365_v17 }
  0x55   : > { %v368_v20 = vsel %vm367_vm1, %v607_v14, %v366_v18 }
  0xca   : > { %v354_v6 = vpop.f32.mrf.mxu0 }
  0xcb   : > { %v355_v8 = vadd.f32 %v603_v5, %v354_v6 }
  0xcd   : > { %v358_v9 = vadd.f32 %v357_v7, %v355_v8 }
  0xcf   : > { %v359_v10 = vsel %vm333_vm0, %v358_v9, 0.0  ;;  %v370_v11 = vmul.f32 %v358_v9, %v358_v9 }
  0xd0   : > { %360 = vadd.xlane.f32.xlu0 %v359_v10 }
  0xd1   : > { %v371_v12 = vsel %vm333_vm0, %v370_v11, 0.0 }
  0xd8   : > { %372 = vadd.xlane.f32.xlu0 %v371_v12 }
 0x143   : > { %v361_v19 = vpop.xlane.xlu0 %360 }
 0x144   : > { %v369_v21 = vmul.f32 %v368_v20, %v361_v19 }
 0x146   : > { %v375_v23 = vmul.f32 %v369_v21, %v369_v21  ;;  %v378_v34 = vsub.f32 %v358_v9, %v369_v21 }
 0x14b   : > { %v373_v22 = vpop.xlane.xlu0 %372 }
 0x14c   : > { %v374_v24 = vmul.f32 %v373_v22, %v368_v20 }
 0x14e   : > { %v376_v25 = vsub.f32 %v374_v24, %v375_v23 }
 0x150   : > { %v377_v26 = vmax.f32 %v376_v25, 0.0 }
 0x152   : > { %v379_v27 = vadd.f32 1e-12, %v377_v26 }
 0x154   : > { %608 = vrsqrt.f32 %v379_v27  ;;  %vm386_vm3 = vweird.f32 %v379_v27 }
 0x15a   : > { %v609_v28 = vpop.eup %608 }
 0x15b   : > { %v381_v29 = vmul.f32 %v609_v28, %v379_v27  ;;  %vm387_vm2 = vweird.f32 %v609_v28 }
 0x15c   : > { %vm388_vm4 = vmor %vm386_vm3, %vm387_vm2 }
 0x15d   : > { %v382_v30 = vmul.f32 %v609_v28, %v381_v29 }
 0x15f   : > { %v383_v31 = vmul.f32 0.5, %v382_v30 }
 0x161   : > { %v384_v32 = vsub.f32 1.5, %v383_v31 }
 0x163   : > { %v385_v33 = vmul.f32 %v609_v28, %v384_v32 }
 0x165   : > { %v389_v36 = vsel %vm388_vm4, %v609_v28, %v385_v33 }
 0x166   : > { %v390_v37 = vmul.f32 %v389_v36, %v378_v34 }
 0x168   : > { %v395_v39 = vmul.f32 %v604_v35, %v390_v37 }
 0x16a   : > { %v400_v40 = vadd.f32 %v605_v38, %v395_v39 }
 0x16c   : > { %401 = vst.msk [vmem:[%s323_s28] sm:$0xff] %vm333_vm0, %v400_v40 }
 0x16d   : > { %727 = shalt.err (!%p724_p10)
}
 0x16e   : > { %546 = dma.vmem_to_hbm [thread:$0]  (%p879_p0), %s416_s8, 128, %s418_s12, %s403_s23  }
 0x16f PF: > { %s1021_s2 = sld [smem:[#allocation14_spill]]  ;;  %s429_s9 = sand.u32 1, %s762_s21  }
 0x170   : > { %s430_s10 = scalar_lea.sflag [#allocation4], %s429_s9 }
 0x175   : > { %p1022_p12 = scmp.ge.s32.totalorder %s1021_s2, 2 }
 0x177   : > { %p560_p5 = pnand %p1022_p12, %p885_p6 }
 0x179   : > { %p561_p11 = pneg %p560_p5 }
 0x17b   : > { %757 = dma.done.wait (%p561_p11), %s430_s10, 128  }
 0x17c   : > { %759 = vsyncadd (%p561_p11), %s430_s10, 4294967168  ;;  %s1023_s24 = sld [smem:[#allocation15_spill]]  ;;  %s1026_s21 = smov %s766_s22 }
 0x17d   : > { %s1024_s13 = sld [smem:[#allocation13_spill]] }
 0x17e   : > { %s1025_s23 = sld [smem:[#allocation16_spill]] }
 0x182   : > { %p22_p2 = scmp.ge.s32.totalorder %s1023_s24, 4  }
 0x183   : > { %s1027_s22 = smov %s1024_s13 }
 0x184   :  { %24 = sbr.rel (!%p22_p2) target bundleno = 9 (0x9), region = 106 }
 0x189   :  { %436 = vsyncpa [#allocation3], 1 }
 0x18a   :  { %438 = vsyncpa [#allocation3 + $0x1], 1 }
 0x18b   :  { %439 = vsyncpa [#allocation6], 1 }
 0x18c   :  { %441 = vsyncpa [#allocation6 + $0x1], 1 }
 0x18d   :  { %442 = vsyncpa [#allocation4], 1 }
 0x18e   :  { %444 = vsyncpa [#allocation4 + $0x1], 1 }

// kernel: _bert_output_fused.1
= control target key start
LH: loop header
LB: loop body
LE: loop exit
PB: predicated region body
PF: predicated region fallthrough
CT: control target
= control target key end

     0   :  { %s998_s0 = inlined_call_operand.hbm [shape: f32[16,32], index: 0, kind: input, shape index: {}]   ;;  %s999_s1 = inlined_call_operand.hbm [shape: f32[16,32], index: 1, kind: input, shape index: {}]   ;;  %s1000_s2 = inlined_call_operand.hbm [shape: f32[32,32], index: 2, kind: input, shape index: {}]   ;;  %s1001_s3 = inlined_call_operand.vmem [shape: f32[1,32], index: 3, kind: input, shape index: {}]   ;;  %s1002_s4 = inlined_call_operand.vmem [shape: f32[1,32], index: 4, kind: input, shape index: {}]   ;;  %s1003_s5 = inlined_call_operand.vmem [shape: f32[1,32], index: 5, kind: input, shape index: {}]   ;;  %s1004_s6 = inlined_call_operand.hbm [shape: f32[16,32], index: 6, kind: output, shape index: {}]  }
   0x1   :  { %1009 = sst [smem:[#allocation17_spill]] %s1000_s2 }
   0x2   :  { %11 = vsyncpa [#allocation3], 0 }
   0x3   :  { %13 = vsyncpa [#allocation3 + $0x1], 0 }
   0x4   :  { %14 = vsyncpa [#allocation6], 0 }
   0x5   :  { %16 = vsyncpa [#allocation6 + $0x1], 0 }
   0x6   :  { %17 = vsyncpa [#allocation4], 0 }
   0x7   :  { %19 = vsyncpa [#allocation4 + $0x1], 0  ;;  %s815_s21 = smov 0   ;;  %s817_s22 = smov 0  }
   0x8   :  { %s819_s23 = smov 0   ;;  %s821_s24 = smov 0  }
   0x9 LB: > { %1010 = sst [smem:[#allocation13_spill]] %s770_s23  ;;  %s839_s28 = sadd.s32 4294967295, %s774_s24   ;;  %s774_s24 = sphi %s821_s24, %s1023_s24   ;;  %s770_s23 = sphi %s819_s23, %s1025_s23   ;;  %s766_s22 = sphi %s817_s22, %s1027_s22   ;;  %s762_s21 = sphi %s815_s21, %s1026_s21  }
   0xa   : > { %1011 = sst [smem:[#allocation14_spill]] %s774_s24  ;;  %p521_p0 = scmp.ge.s32.totalorder %s774_s24, 1 }
   0xb   : > { %s1012_s2 = sld [smem:[#allocation17_spill]]  ;;  %p46_p1 = scmp.eq.s32.totalorder %s839_s28, 0 }
   0xc   : > { %p192_p2 = scmp.lt.s32.totalorder %s774_s24, 3  ;;  %s776_s30 = smov [#allocation7]  }
   0xd   : > { %s205_s7 = sshll.u32 %s776_s30, 4  ;;  %s777_s8 = smov 128   ;;  %s206_s7 = int_to_ptr.vmem [resolvable:$true] %s205_s7 }
   0xe   : > { %p844_p3 = pnand %p521_p0, %p192_p2  ;;  %s778_s9 = smov 8  }
   0xf   : > { %s520_s10 = sadd.s32 4294967294, %s774_s24   ;;  %s855_s11 = sadd.s32 1, %s774_s24  }
  0x10   : > { %p548_p4 = pneg %p844_p3  ;;  %1014 = sst [smem:[#allocation15_spill]] %s855_s11 }
  0x11   : > { %s203_s27 = sshll.u32 %s1012_s2, 4  ;;  %s32_s12 = sadd.s32 1, %s770_s23  ;;  %s204_s27 = int_to_ptr.hbm [resolvable:$true] %s203_s27 }
  0x12   : > { %p549_p6 = pnand %p548_p4, %p46_p1  ;;  %s29_s13 = ssub.s32 %s774_s24, %s855_s11 }
  0x13   : > { %p39_p7 = scmp.ne.s32.totalorder %s770_s23, %s766_s22  ;;  %p30_p8 = scmp.eq.s32.totalorder %s29_s13, 0 }
  0x14   : > { %551 = dma.hbm_to_vmem [thread:$0]  (!%p549_p6), %s204_s27, 512, %s206_s7, [#allocation6], %s777_s8, %s777_s8, %s778_s9  }
  0x15   : > { %p40_p9 = scmp.eq.s32.totalorder %s774_s24, 0  ;;  %p45_p10 = scmp.ne.s32.totalorder %s766_s22, %s762_s21 }
  0x16   : > { %p179_p11 = scmp.eq.s32.totalorder %s839_s28, 1  ;;  %p185_p2 = scmp.eq.s32.totalorder %s520_s10, 1 }
  0x17   : > { %s867_s14 = scalar_select %p30_p8, %s770_s23, %s32_s12  }
  0x18   : > { %p869_p12 = por %p40_p9, %p39_p7  ;;  %p875_p13 = por %p46_p1, %p45_p10 }
  0x19   : > { %1015 = sst [smem:[#allocation16_spill]] %s867_s14  ;;  %p879_p0 = por %p179_p11, %p39_p7 }
  0x1a   : > { %p564_p4 = scmp.lt.s32.totalorder %s774_s24, 2  ;;  %s228_s18 = sand.u32 1, %s770_s23  }
  0x1b   : > { %p885_p6 = por %p185_p2, %p45_p10  ;;  %s524_s20 = sshll.u32 %s228_s18, 3 }
  0x1c   : > { %s525_s25 = sshll.u32 %s774_s24, 3  ;;  %s232_s8 = scalar_lea.vmem [#allocation2], %s524_s20 }
  0x1d   : > { %s236_s30 = scalar_lea.hbm %s998_s0, %s525_s25  ;;  %s240_s9 = sshll.u32 %s232_s8, 4  ;;  %s241_s9 = int_to_ptr.vmem [resolvable:$true] %s240_s9 }
  0x1e   : > { %s238_s7 = sshll.u32 %s236_s30, 4  ;;  %p895_p7 = pnand %p564_p4, %p869_p12  ;;  %s239_s7 = int_to_ptr.hbm [resolvable:$true] %s238_s7 }
  0x1f   : > { %s255_s2 = scalar_lea.hbm %s999_s1, %s525_s25  ;;  %s247_s14 = sand.u32 1, %s774_s24  }
  0x20   : > { %s229_s23 = scalar_lea.sflag [#allocation3], %s228_s18  ;;  %s640_s26 = sshra.s32 %s239_s7, 4  ;;  %s641_s26 = int_to_ptr.hbm [resolvable:$true] %s640_s26 }
  0x21   : > { %s642_s27 = scalar_lea.hbm %s641_s26, 8  ;;  %p644_p9 = pneg %p895_p7 }
  0x22   : > { %p643_p8 = scmp.ne.s32.totalorder %s641_s26, %s642_s27  ;;  %s647_s8 = scalar_lea.hbm %s998_s0, 16 }
  0x23   : > { %p648_p12 = scmp.lt.s32.totalorder %s641_s26, %s998_s0  ;;  %p649_p2 = scmp.lt.s32.totalorder %s647_s8, %s642_s27 }
  0x24   : > { %p645_p10 = pnand %p644_p9, %p643_p8 }
  0x25   : > { %p650_p4 = por %p649_p2, %p648_p12 }
  0x26   : > { %p646_p11 = pneg %p645_p10 }
  0x28   : > { %p651_p5 = pnand %p650_p4, %p646_p11 }
  0x2a   : > { %654 = shalt.err (!%p651_p5)
}
  0x2b   : > { %555 = dma.hbm_to_vmem [thread:$0]  (!%p895_p7), %s239_s7, 128, %s241_s9, %s229_s23  }
  0x2c   : > { %s257_s18 = sshll.u32 %s255_s2, 4  ;;  %s251_s25 = scalar_lea.vmem [#allocation5], %s524_s20  ;;  %s258_s18 = int_to_ptr.hbm [resolvable:$true] %s257_s18 }
  0x2d   : > { %s259_s11 = sshll.u32 %s251_s25, 4  ;;  %s248_s24 = scalar_lea.sflag [#allocation6], %s247_s14  ;;  %s260_s11 = int_to_ptr.vmem [resolvable:$true] %s259_s11 }
  0x2e   : > { %s670_s15 = sshra.s32 %s258_s18, 4  ;;  %s677_s8 = scalar_lea.hbm %s999_s1, 16  ;;  %s671_s15 = int_to_ptr.hbm [resolvable:$true] %s670_s15 }
  0x2f   : > { %s672_s30 = scalar_lea.hbm %s671_s15, 8  ;;  %p678_p5 = scmp.lt.s32.totalorder %s671_s15, %s999_s1 }
  0x30   : > { %p673_p8 = scmp.ne.s32.totalorder %s671_s15, %s672_s30  ;;  %p679_p11 = scmp.lt.s32.totalorder %s677_s8, %s672_s30 }
  0x32   : > { %p675_p10 = pnand %p673_p8, %p644_p9  ;;  %p680_p2 = por %p679_p11, %p678_p5 }
  0x34   : > { %p676_p12 = pneg %p675_p10 }
  0x36   : > { %p681_p4 = pnand %p680_p2, %p676_p12 }
  0x38   : > { %684 = shalt.err (!%p681_p4)
}
  0x39   : > { %558 = dma.hbm_to_vmem [thread:$0]  (!%p895_p7), %s258_s18, 128, %s260_s11, %s248_s24  }
  0x3a   : > { %268 = sbr.rel (%p844_p3) target bundleno = 367 (0x16f), region = 44  ;;  %s930_s2 = sand.u32 (!%p844_p3), 1, %s766_s22  }
  0x3b   : > { %s933_s14 = sshll.u32 (!%p844_p3), %s930_s2, 3  ;;  %s271_s20 = scalar_lea.sflag (!%p844_p3), [#allocation3], %s930_s2 }
  0x3c   : > { %s274_s7 = scalar_lea.vmem (!%p844_p3), [#allocation2], %s933_s14 }
  0x3f   : > { %745 = dma.done.wait (%p875_p13), %s271_s20, 128  }
  0x40   : > { %747 = vsyncadd (%p875_p13), %s271_s20, 4294967168  ;;  %s280_s24 = sand.u32 1, %s839_s28   ;;  %s284_s11 = scalar_lea.vmem [#allocation5], %s933_s14 }
  0x41   : > { %s281_s29 = scalar_lea.sflag [#allocation6], %s280_s24 }
  0x42   : > { %749 = dma.done.wait (%p875_p13), %s281_s29, 128  }
  0x43   : > { %751 = vsyncadd (%p875_p13), %s281_s29, 4294967168 }
  0x44   : > { %753 = dma.done.wait (%p46_p1), [#allocation6], 512  }
  0x45   : > { %755 = vsyncadd (%p46_p1), [#allocation6], 4294966784  ;;  %v328_v0 = vld [vmem:[#allocation7 + $0x18] sm:$0xff]  ;;  %v327_v1 = vld [vmem:[#allocation7 + $0x10] sm:$0xff]  ;;  %vm333_vm0 = vcmask 261120   ;;  %v779_v13 = vmov 32.0  }
  0x46   : > { %349 = vmatpush.msra.mxu0 %v328_v0  ;;  %v326_v2 = vld [vmem:[#allocation7 + $0x8] sm:$0xff]  ;;  %v325_v3 = vld [vmem:[#allocation7] sm:$0xff]  ;;  %v357_v7 = vld [vmem:[%s284_s11] sm:$0xff]  ;;  %606 = vrcp.f32 %v779_v13  ;;  %s535_s10 = sshll.u32 %s839_s28, 3  ;;  %s323_s28 = scalar_lea.vmem [#allocation8], %s933_s14 }
  0x47   : > { %v324_v4 = vld [vmem:[%s274_s7] sm:$0xff]  ;;  %s413_s30 = scalar_lea.hbm %s1004_s6, %s535_s10  ;;  %s415_s8 = sshll.u32 %s323_s28, 4  ;;  %s416_s8 = int_to_ptr.vmem [resolvable:$true] %s415_s8 }
  0x48   : > { %350 = vmatpush.msra.mxu0 %v327_v1  ;;  %v603_v5 = vld [vmem:[%s1001_s3] ss:$0 sm:$0xff]  ;;  %s417_s12 = sshll.u32 %s413_s30, 4  ;;  %s403_s23 = scalar_lea.sflag [#allocation4], %s930_s2  ;;  %s418_s12 = int_to_ptr.hbm [resolvable:$true] %s417_s12 }
  0x49   : > { %v604_v35 = vld [vmem:[%s1002_s4] ss:$0 sm:$0xff]  ;;  %s714_s20 = sshra.s32 %s418_s12, 4  ;;  %s720_s14 = scalar_lea.hbm %s1004_s6, 16  ;;  %s715_s20 = int_to_ptr.hbm [resolvable:$true] %s714_s20 }
  0x4a   : > { %351 = vmatpush.msra.mxu0 %v326_v2  ;;  %v605_v38 = vld [vmem:[%s1003_s5] ss:$0 sm:$0xff]  ;;  %s716_s7 = scalar_lea.hbm %s715_s20, 8  ;;  %p721_p7 = scmp.lt.s32.totalorder %s715_s20, %s1004_s6 }
  0x4b   : > { %p717_p1 = scmp.ne.s32.totalorder %s715_s20, %s716_s7  ;;  %p722_p9 = scmp.lt.s32.totalorder %s720_s14, %s716_s7 }
  0x4c   : > { %352 = vmatpush.msra.mxu0 %v325_v3  ;;  %v607_v14 = vpop.eup %606 }
  0x4d   : > { %533 = vmatmul.msk.f32.vlgmr.msra.gmra.mxu0 %vm333_vm0, %v324_v4  ;;  %v363_v15 = vmul.f32 32.0, %v607_v14  ;;  %vm367_vm1 = vweird.f32 %v607_v14  ;;  %p718_p3 = pnand %p717_p1, %p879_p0  ;;  %p723_p8 = por %p722_p9, %p721_p7 }
  0x4f   : > { %v364_v16 = vsub.f32 1.0, %v363_v15  ;;  %p719_p13 = pneg %p718_p3 }
  0x51   : > { %v365_v17 = vmul.f32 %v607_v14, %v364_v16  ;;  %p724_p10 = pnand %p723_p8, %p719_p13 }
  0x53   : > { %v366_v18 = vadd.f32 %v607_v14, %v365_v17 }
  0x55   : > { %v368_v20 = vsel %vm367_vm1, %v607_v14, %v366_v18 }
  0xca   : > { %v354_v6 = vpop.f32.mrf.mxu0 }
  0xcb   : > { %v355_v8 = vadd.f32 %v603_v5, %v354_v6 }
  0xcd   : > { %v358_v9 = vadd.f32 %v357_v7, %v355_v8 }
  0xcf   : > { %v359_v10 = vsel %vm333_vm0, %v358_v9, 0.0  ;;  %v370_v11 = vmul.f32 %v358_v9, %v358_v9 }
  0xd0   : > { %360 = vadd.xlane.f32.xlu0 %v359_v10 }
  0xd1   : > { %v371_v12 = vsel %vm333_vm0, %v370_v11, 0.0 }
  0xd8   : > { %372 = vadd.xlane.f32.xlu0 %v371_v12 }
 0x143   : > { %v361_v19 = vpop.xlane.xlu0 %360 }
 0x144   : > { %v369_v21 = vmul.f32 %v368_v20, %v361_v19 }
 0x146   : > { %v375_v23 = vmul.f32 %v369_v21, %v369_v21  ;;  %v378_v34 = vsub.f32 %v358_v9, %v369_v21 }
 0x14b   : > { %v373_v22 = vpop.xlane.xlu0 %372 }
 0x14c   : > { %v374_v24 = vmul.f32 %v373_v22, %v368_v20 }
 0x14e   : > { %v376_v25 = vsub.f32 %v374_v24, %v375_v23 }
 0x150   : > { %v377_v26 = vmax.f32 %v376_v25, 0.0 }
 0x152   : > { %v379_v27 = vadd.f32 1e-12, %v377_v26 }
 0x154   : > { %608 = vrsqrt.f32 %v379_v27  ;;  %vm386_vm3 = vweird.f32 %v379_v27 }
 0x15a   : > { %v609_v28 = vpop.eup %608 }
 0x15b   : > { %v381_v29 = vmul.f32 %v609_v28, %v379_v27  ;;  %vm387_vm2 = vweird.f32 %v609_v28 }
 0x15c   : > { %vm388_vm4 = vmor %vm386_vm3, %vm387_vm2 }
 0x15d   : > { %v382_v30 = vmul.f32 %v609_v28, %v381_v29 }
 0x15f   : > { %v383_v31 = vmul.f32 0.5, %v382_v30 }
 0x161   : > { %v384_v32 = vsub.f32 1.5, %v383_v31 }
 0x163   : > { %v385_v33 = vmul.f32 %v609_v28, %v384_v32 }
 0x165   : > { %v389_v36 = vsel %vm388_vm4, %v609_v28, %v385_v33 }
 0x166   : > { %v390_v37 = vmul.f32 %v389_v36, %v378_v34 }
 0x168   : > { %v395_v39 = vmul.f32 %v604_v35, %v390_v37 }
 0x16a   : > { %v400_v40 = vadd.f32 %v605_v38, %v395_v39 }
 0x16c   : > { %401 = vst.msk [vmem:[%s323_s28] sm:$0xff] %vm333_vm0, %v400_v40 }
 0x16d   : > { %727 = shalt.err (!%p724_p10)
}
 0x16e   : > { %546 = dma.vmem_to_hbm [thread:$0]  (%p879_p0), %s416_s8, 128, %s418_s12, %s403_s23  }
 0x16f PF: > { %s1021_s2 = sld [smem:[#allocation14_spill]]  ;;  %s429_s9 = sand.u32 1, %s762_s21  }
 0x170   : > { %s430_s10 = scalar_lea.sflag [#allocation4], %s429_s9 }
 0x175   : > { %p1022_p12 = scmp.ge.s32.totalorder %s1021_s2, 2 }
 0x177   : > { %p560_p5 = pnand %p1022_p12, %p885_p6 }
 0x179   : > { %p561_p11 = pneg %p560_p5 }
 0x17b   : > { %757 = dma.done.wait (%p561_p11), %s430_s10, 128  }
 0x17c   : > { %759 = vsyncadd (%p561_p11), %s430_s10, 4294967168  ;;  %s1023_s24 = sld [smem:[#allocation15_spill]]  ;;  %s1026_s21 = smov %s766_s22 }
 0x17d   : > { %s1024_s13 = sld [smem:[#allocation13_spill]] }
 0x17e   : > { %s1025_s23 = sld [smem:[#allocation16_spill]] }
 0x182   : > { %p22_p2 = scmp.ge.s32.totalorder %s1023_s24, 4  }
 0x183   : > { %s1027_s22 = smov %s1024_s13 }
 0x184   :  { %24 = sbr.rel (!%p22_p2) target bundleno = 9 (0x9), region = 106 }
 0x189   :  { %436 = vsyncpa [#allocation3], 1 }
 0x18a   :  { %438 = vsyncpa [#allocation3 + $0x1], 1 }
 0x18b   :  { %439 = vsyncpa [#allocation6], 1 }
 0x18c   :  { %441 = vsyncpa [#allocation6 + $0x1], 1 }
 0x18d   :  { %442 = vsyncpa [#allocation4], 1 }
 0x18e   :  { %444 = vsyncpa [#allocation4 + $0x1], 1 }

</bundles_post_ra>
